<compile_context>
chip_gen: v5e
topology: v5e:2x2
jax: 0.10.0
libtpu: 0.0.40
codegen_flags: <defaults>
</compile_context>

<pallas_src>
import functools

import jax
import jax.numpy as jnp
from jax.experimental import pallas as pl
from jax.experimental.pallas import tpu as pltpu


def _kpt_loss_kernel(packed_ref, area_ref, inv_sig_ref, out_ref, *,
                     k_valid, inv_denom):
    # packed_ref: (5, Np, Kp) = [pred_x, pred_y, gt_x, gt_y, mask]
    px = packed_ref[0].astype(jnp.float32)
    py = packed_ref[1].astype(jnp.float32)
    gx = packed_ref[2].astype(jnp.float32)
    gy = packed_ref[3].astype(jnp.float32)
    mask = packed_ref[4].astype(jnp.float32)
    area = area_ref[...]           # (Np, 1)  f32
    inv_sig = inv_sig_ref[...]     # (1, Kp)  f32 == 1/(8*sigma^2), 0 on pad

    # d = (pred_x - gt_x)^2 + (pred_y - gt_y)^2
    dx = px - gx
    dy = py - gy
    d = dx * dx + dy * dy                                          # (Np, Kp)

    # kpt_loss_factor = K / (count_nonzero(mask, axis=1) + 1e-9)
    nonzero = (mask != 0).astype(jnp.float32)
    cnt = jnp.sum(nonzero, axis=1, keepdims=True)                  # (Np, 1)
    klf = jnp.float32(k_valid) * pl.reciprocal(
        cnt + jnp.float32(1e-9), approx=True)                      # (Np, 1)

    # e = d / ((2*sigma)^2 * (area + 1e-9) * 2) = d * inv_sig / (area + 1e-9)
    inv_area = pl.reciprocal(area + jnp.float32(1e-9), approx=True)  # (Np, 1)
    e = d * inv_sig * inv_area                                      # (Np, Kp)

    val = klf * ((1.0 - jnp.exp(-e)) * mask)                        # (Np, Kp)

    # mean over the ORIGINAL N*K elements (padding contributes exactly 0)
    out_ref[0, 0] = jnp.sum(val) * jnp.float32(inv_denom)


def keypoint_loss(pred_kpts, gt_kpts, kpt_mask, area, sigmas):
    """Pallas implementation of KeypointLoss.forward.

    pred_kpts: (N, K, C) with C >= 2  (only x/y used)
    gt_kpts:   (N, K, C') with C' >= 2
    kpt_mask:  (N, K)
    area:      (N, 1)
    sigmas:    (K,)
    Returns a scalar f32 loss.
    """
    n, k = kpt_mask.shape
    n_pad = -(-n // 8) * 8        # sublane-align
    k_pad = -(-k // 128) * 128    # lane-align

    dt = pred_kpts.dtype
    # One fused stack (+pad) -> single packed operand; cast happens in-kernel.
    packed = jnp.stack(
        [pred_kpts[..., 0], pred_kpts[..., 1],
         gt_kpts[..., 0].astype(dt), gt_kpts[..., 1].astype(dt),
         kpt_mask.astype(dt)],
        axis=0)
    packed = jnp.pad(packed, ((0, 0), (0, n_pad - n), (0, k_pad - k)))

    area2 = jnp.pad(area.reshape(n, 1).astype(jnp.float32),
                    ((0, n_pad - n), (0, 0)))

    # Fold (2*sigma)^2 * 2 into a single data-independent multiplier.
    inv_sig = (1.0 / (8.0 * jnp.square(sigmas.astype(jnp.float32)))).reshape(1, k)
    inv_sig = jnp.pad(inv_sig, ((0, 0), (0, k_pad - k)))

    cost = pl.CostEstimate(
        flops=10 * n_pad * k_pad,
        transcendentals=n_pad * k_pad,
        bytes_accessed=(packed.size * packed.dtype.itemsize
                        + area2.size * 4 + inv_sig.size * 4 + 4),
    )

    vmem = pl.BlockSpec(memory_space=pltpu.MemorySpace.VMEM)
    out = pl.pallas_call(
        functools.partial(_kpt_loss_kernel, k_valid=k,
                          inv_denom=1.0 / float(n * k)),
        out_shape=jax.ShapeDtypeStruct((1, 1), jnp.float32),
        in_specs=[vmem, vmem, vmem],
        out_specs=pl.BlockSpec(memory_space=pltpu.MemorySpace.SMEM),
        cost_estimate=cost,
    )(packed, area2, inv_sig)
    return out[0, 0]


def _reference(pred_kpts, gt_kpts, kpt_mask, area, sigmas):
    """Pure-JAX reference mirroring the PyTorch module exactly."""
    d = (pred_kpts[..., 0] - gt_kpts[..., 0]) ** 2 + \
        (pred_kpts[..., 1] - gt_kpts[..., 1]) ** 2
    kpt_loss_factor = kpt_mask.shape[1] / (
        jnp.sum((kpt_mask != 0).astype(jnp.float32), axis=1) + 1e-9)
    e = d / ((2 * sigmas) ** 2 * (area + 1e-9) * 2)
    return jnp.mean(kpt_loss_factor.reshape(-1, 1) *
                    ((1 - jnp.exp(-e)) * kpt_mask))


if __name__ == "__main__":
    key = jax.random.PRNGKey(0)
    N, K = 8, 17  # 17 COCO-style keypoints

    k1, k2, k3, k4 = jax.random.split(key, 4)
    pred_kpts = jax.random.uniform(k1, (N, K, 3), jnp.float32) * 64.0
    gt_kpts = jax.random.uniform(k2, (N, K, 2), jnp.float32) * 64.0
    kpt_mask = (jax.random.uniform(k3, (N, K)) > 0.3).astype(jnp.float32)
    area = jax.random.uniform(k4, (N, 1), jnp.float32) * 100.0 + 1.0

    # Deterministic synthetic OKS sigmas (shape (K,)), normalized like COCO.
    sigmas = (jnp.linspace(0.25, 1.0, K, dtype=jnp.float32)) / 10.0

    loss = keypoint_loss(pred_kpts, gt_kpts, kpt_mask, area, sigmas)
    loss = jax.block_until_ready(loss)

    ref = _reference(pred_kpts, gt_kpts, kpt_mask, area, sigmas)
    # Tolerance accounts for the EUP approximate reciprocals (approx=True).
    assert jnp.allclose(loss, ref, rtol=5e-4, atol=1e-5), (loss, ref)

    print("KERNEL_OK")
</pallas_src>

<mosaic_0001>
module attributes {stable_mosaic.version = 11 : i64} {
  func.func @_kpt_loss_kernel(%arg0: memref<5x8x128xf32, #tpu.memory_space<vmem>>, %arg1: memref<8x1xf32, #tpu.memory_space<vmem>>, %arg2: memref<1x128xf32, #tpu.memory_space<vmem>>, %arg3: memref<1x1xf32, #tpu.memory_space<smem>>) attributes {dimension_semantics = [], scalar_prefetch = 0 : i64, scratch_operands = 0 : i64, tpu.core_type = #tpu.core_type<tc>} {
    %c0 = arith.constant 0 : index
    %c0_0 = arith.constant 0 : index
    %c0_1 = arith.constant 0 : index
    %0 = vector.load %arg0[%c0, %c0_0, %c0_1] : memref<5x8x128xf32, #tpu.memory_space<vmem>>, vector<1x8x128xf32>
    %1 = vector.shape_cast %0 : vector<1x8x128xf32> to vector<8x128xf32>
    %c1 = arith.constant 1 : index
    %c0_2 = arith.constant 0 : index
    %c0_3 = arith.constant 0 : index
    %2 = vector.load %arg0[%c1, %c0_2, %c0_3] : memref<5x8x128xf32, #tpu.memory_space<vmem>>, vector<1x8x128xf32>
    %3 = vector.shape_cast %2 : vector<1x8x128xf32> to vector<8x128xf32>
    %c2 = arith.constant 2 : index
    %c0_4 = arith.constant 0 : index
    %c0_5 = arith.constant 0 : index
    %4 = vector.load %arg0[%c2, %c0_4, %c0_5] : memref<5x8x128xf32, #tpu.memory_space<vmem>>, vector<1x8x128xf32>
    %5 = vector.shape_cast %4 : vector<1x8x128xf32> to vector<8x128xf32>
    %c3 = arith.constant 3 : index
    %c0_6 = arith.constant 0 : index
    %c0_7 = arith.constant 0 : index
    %6 = vector.load %arg0[%c3, %c0_6, %c0_7] : memref<5x8x128xf32, #tpu.memory_space<vmem>>, vector<1x8x128xf32>
    %7 = vector.shape_cast %6 : vector<1x8x128xf32> to vector<8x128xf32>
    %c4 = arith.constant 4 : index
    %c0_8 = arith.constant 0 : index
    %c0_9 = arith.constant 0 : index
    %8 = vector.load %arg0[%c4, %c0_8, %c0_9] : memref<5x8x128xf32, #tpu.memory_space<vmem>>, vector<1x8x128xf32>
    %9 = vector.shape_cast %8 : vector<1x8x128xf32> to vector<8x128xf32>
    %c0_10 = arith.constant 0 : index
    %c0_11 = arith.constant 0 : index
    %10 = vector.load %arg1[%c0_10, %c0_11] : memref<8x1xf32, #tpu.memory_space<vmem>>, vector<8x1xf32>
    %c0_12 = arith.constant 0 : index
    %c0_13 = arith.constant 0 : index
    %11 = vector.load %arg2[%c0_12, %c0_13] : memref<1x128xf32, #tpu.memory_space<vmem>>, vector<1x128xf32>
    %12 = arith.subf %1, %5 : vector<8x128xf32>
    %13 = arith.subf %3, %7 : vector<8x128xf32>
    %14 = arith.mulf %12, %12 : vector<8x128xf32>
    %15 = arith.mulf %13, %13 : vector<8x128xf32>
    %16 = arith.addf %14, %15 : vector<8x128xf32>
    %cst = arith.constant 0.000000e+00 : f32
    %17 = vector.broadcast %cst : f32 to vector<8x128xf32>
    %18 = arith.cmpf one, %9, %17 : vector<8x128xf32>
    %19 = arith.extui %18 : vector<8x128xi1> to vector<8x128xi32>
    %20 = arith.sitofp %19 : vector<8x128xi32> to vector<8x128xf32>
    %cst_14 = arith.constant dense<0.000000e+00> : vector<8xf32>
    %21 = vector.multi_reduction <add>, %20, %cst_14 [1] : vector<8x128xf32> to vector<8xf32>
    %22 = vector.shape_cast %21 : vector<8xf32> to vector<8x1xf32>
    %cst_15 = arith.constant 9.99999971E-10 : f32
    %23 = vector.broadcast %cst_15 : f32 to vector<8x1xf32>
    %24 = arith.addf %22, %23 : vector<8x1xf32>
    %25 = tpu.reciprocal %24 {approx = true} : vector<8x1xf32> -> vector<8x1xf32>
    %cst_16 = arith.constant 1.700000e+01 : f32
    %26 = vector.broadcast %cst_16 : f32 to vector<8x1xf32>
    %27 = arith.mulf %26, %25 : vector<8x1xf32>
    %cst_17 = arith.constant 9.99999971E-10 : f32
    %28 = vector.broadcast %cst_17 : f32 to vector<8x1xf32>
    %29 = arith.addf %10, %28 : vector<8x1xf32>
    %30 = tpu.reciprocal %29 {approx = true} : vector<8x1xf32> -> vector<8x1xf32>
    %31 = vector.broadcast %11 : vector<1x128xf32> to vector<8x128xf32>
    %32 = arith.mulf %16, %31 : vector<8x128xf32>
    %33 = vector.broadcast %30 : vector<8x1xf32> to vector<8x128xf32>
    %34 = arith.mulf %32, %33 : vector<8x128xf32>
    %cst_18 = arith.constant 0.000000e+00 : f32
    %35 = vector.broadcast %cst_18 : f32 to vector<8x128xf32>
    %36 = arith.subf %35, %34 : vector<8x128xf32>
    %37 = math.exp %36 : vector<8x128xf32>
    %cst_19 = arith.constant 1.000000e+00 : f32
    %38 = vector.broadcast %cst_19 : f32 to vector<8x128xf32>
    %39 = arith.subf %38, %37 : vector<8x128xf32>
    %40 = arith.mulf %39, %9 : vector<8x128xf32>
    %41 = vector.broadcast %27 : vector<8x1xf32> to vector<8x128xf32>
    %42 = arith.mulf %41, %40 : vector<8x128xf32>
    %43 = vector.shape_cast %42 : vector<8x128xf32> to vector<1x8x128xf32>
    %cst_20 = arith.constant dense<0.000000e+00> : vector<1xf32>
    %44 = vector.multi_reduction <add>, %43, %cst_20 [1, 2] : vector<1x8x128xf32> to vector<1xf32>
    %45 = vector.shape_cast %44 : vector<1xf32> to vector<1x1x1xf32>
    %46 = vector.extract %45[0, 0, 0] : f32 from vector<1x1x1xf32>
    %cst_21 = arith.constant 0.0073529412 : f32
    %47 = arith.mulf %46, %cst_21 : f32
    %c0_22 = arith.constant 0 : index
    %c0_23 = arith.constant 0 : index
    %48 = memref.load %arg3[%c0_22, %c0_23] : memref<1x1xf32, #tpu.memory_space<smem>>
    memref.store %47, %arg3[%c0_22, %c0_23] : memref<1x1xf32, #tpu.memory_space<smem>>
    return
  }
}

</mosaic_0001>

<bundles_post_ra>
// kernel: tpu_custom_call.1
= control target key start
LH: loop header
LB: loop body
LE: loop exit
PB: predicated region body
PF: predicated region fallthrough
CT: control target
= control target key end

     0   :  { %8 = vsyncpa [#allocation3], 0  ;;  %s196_s0 = inlined_call_operand.hbm [shape: f32[5,8,128], index: 0, kind: input, shape index: {}]   ;;  %s197_s1 = inlined_call_operand.vmem [shape: f32[8,1], index: 1, kind: input, shape index: {}]   ;;  %s198_s2 = inlined_call_operand.vmem [shape: f32[1,128], index: 2, kind: input, shape index: {}]   ;;  %s199_s3 = inlined_call_operand.hbm [shape: f32[1,1], index: 3, kind: output, shape index: {}]  }
   0x1   :  { %9 = vsyncpa [#allocation4], 0  ;;  %s14_s14 = sshll.u32 %s196_s0, 4  ;;  %s158_s15 = smov [#allocation2]   ;;  %s15_s14 = int_to_ptr.hbm [resolvable:$true] %s14_s14 }
   0x2   :  { %s16_s16 = sshll.u32 %s158_s15, 4  ;;  %s159_s17 = smov 128   ;;  %s17_s16 = int_to_ptr.vmem [resolvable:$true] %s16_s16 }
   0x3   :  { %s160_s18 = smov 8  }
   0x4   :  { %22 = dma.hbm_to_vmem [thread:$0]  %s15_s14, 640, %s17_s16, [#allocation3], %s159_s17, %s159_s17, %s160_s18  }
   0x5   :  { %154 = dma.done.wait [#allocation3], 640  }
   0x6   :  { %155 = vsyncadd [#allocation3], 4294966656  ;;  %v161_v0 = vmov 0   ;;  %v40_v1 = vld [vmem:[%s197_s1] sm:$0xff]  ;;  %v162_v5 = vmov 0.0   ;;  %v33_v8 = vld [vmem:[#allocation2 + $0x8] sm:$0xff] }
   0x7   :  { %110 = vset.pattern.permute.xlu0 %v161_v0  ;;  %v55_v2 = vadd.f32 1e-09, %v40_v1  ;;  %v39_v4 = vld [vmem:[#allocation2 + $0x20] sm:$0xff]  ;;  %v35_v9 = vld [vmem:[#allocation2 + $0x10] sm:$0xff]  ;;  %v37_v10 = vld [vmem:[#allocation2 + $0x18] sm:$0xff]  ;;  %s90_s22 = sshll.u32 %s199_s3, 4  ;;  %s91_s22 = int_to_ptr.hbm [resolvable:$true] %s90_s22 }
   0x8   :  { %vm47_vm0 = vcmp.ne.f32.partialorder %v39_v4, 0.0  ;;  %v31_v7 = vld [vmem:[#allocation2] sm:$0xff]  ;;  %v43_v12 = vsub.f32 %v33_v8, %v37_v10  ;;  %s163_s25 = smov [#allocation5]  }
   0x9   :  { %112 = vrcp.f32 %v55_v2  ;;  %v101_v6 = vsel %vm47_vm0, 1.0, %v162_v5  ;;  %v42_v11 = vsub.f32 %v31_v7, %v35_v9  ;;  %v111_v15 = vld [vmem:[%s198_s2] ss:$0 sm:$0xff] }
   0xa   :  { %v45_v14 = vmul.f32 %v43_v12, %v43_v12 }
   0xb   :  { %v44_v13 = vmul.f32 %v42_v11, %v42_v11 }
   0xd   :  { %v46_v16 = vadd.f32 %v45_v14, %v44_v13 }
   0xf   :  { %v113_v3 = vpop.eup %112  ;;  %v60_v17 = vmul.f32 %v111_v15, %v46_v16 }
  0x10   :  { %63 = vperm.xlu0 %110, %v113_v3  }
  0x3a   :  { %50 = vadd.xlane.f32.xlu0 %v101_v6 }
  0x82   :  { %v64_v18 = vpop.permute.xlu0 %63 }
  0x83   :  { %v66_v19 = vmul.f32 %v64_v18, %v60_v17 }
  0x85   :  { %v67_v20 = vsub.f32 0.0, %v66_v19 }
  0x87   :  { %v68_v21 = vmul.f32 1.442695, %v67_v20 }
  0x89   :  { %114 = vpow2.f32 %v68_v21 }
  0x8f   :  { %v115_v24 = vpop.eup %114 }
  0x90   :  { %v70_v25 = vsub.f32 1.0, %v115_v24 }
  0x92   :  { %v71_v28 = vmul.f32 %v70_v25, %v39_v4 }
  0xad   :  { %v51_v22 = vpop.xlane.xlu0 %50 }
  0xae   :  { %v52_v23 = vadd.f32 1e-09, %v51_v22 }
  0xb0   :  { %116 = vrcp.f32 %v52_v23 }
  0xb6   :  { %v117_v26 = vpop.eup %116 }
  0xb7   :  { %v54_v27 = vmul.f32 17.0, %v117_v26 }
  0xb9   :  { %v72_v29 = vmul.f32 %v71_v28, %v54_v27 }
  0xbb   :  { %73 = vadd.xlane.f32.xlu1 %v72_v29 }
 0x12e   :  { %v74_v30 = vpop.xlane.xlu1 %73 }
 0x12f   :  { %v75_v31 = vrot.slane %v74_v30, 4 }
 0x131   :  { %v76_v32 = vadd.f32 %v75_v31, %v74_v30 }
 0x133   :  { %v77_v33 = vrot.slane %v76_v32, 2 }
 0x135   :  { %v78_v34 = vadd.f32 %v77_v33, %v76_v32 }
 0x137   :  { %v79_v35 = vrot.slane %v78_v34, 1 }
 0x139   :  { %v80_v36 = vadd.f32 %v79_v35, %v78_v34 }
 0x13b   :  { %102 = vpush %v80_v36 }
 0x16c   :  { %s103_s23 = spop %102 }
 0x16d   :  { %s82_s24 = smul.f32 0.007352941, %s103_s23 }
 0x16f   :  { %84 = sst [smem:[#allocation5]] %s82_s24 }
 0x170   :  { %93 = dma.smem_to_hbm %s163_s25, 16, %s91_s22, [#allocation4]  }
 0x171   :  { %156 = dma.done.wait [#allocation4], 16  }
 0x172   :  { %157 = vsyncadd [#allocation4], 4294967280 }
 0x173   :  { %98 = sfence }
 0x174   :  { %99 = vsyncpa [#allocation3], 1 }
 0x175   :  { %100 = vsyncpa [#allocation4], 1 }

</bundles_post_ra>
